<compile_context>
chip_gen: v7x
topology: tpu7x:2x2x1
jax: 0.10.0
libtpu: 0.0.40
codegen_flags: <defaults>
</compile_context>

<pallas_src>
import functools

import jax
import jax.numpy as jnp
import numpy as np
from jax.experimental import pallas as pl
from jax.experimental.pallas import tpu as pltpu


def _center_crop(img, output_size):
    """torchvision.transforms.functional.center_crop (crop-only path)."""
    ch, cw = output_size
    h, w = img.shape[-2], img.shape[-1]
    top = int(round((h - ch) / 2.0))
    left = int(round((w - cw) / 2.0))
    return img[..., top:top + ch, left:left + cw]


def _dft2_mats(H, W):
    """Full 2-D DFT matrix (cos, -sin parts) acting on row-major-flattened images.

    M[(u*W+v), (h*W+w)] = exp(-2*pi*i*(u*h/H + v*w/W)); M is symmetric, so the
    batched transform of flattened images X (B, HW) is simply X @ M.
    """
    hh = jnp.arange(H, dtype=jnp.float32)
    ww = jnp.arange(W, dtype=jnp.float32)
    ang_h = (2.0 * jnp.pi / float(H)) * jnp.outer(hh, hh)      # (H, H)  u,h
    ang_w = (2.0 * jnp.pi / float(W)) * jnp.outer(ww, ww)      # (W, W)  v,w
    ang = ang_h[:, None, :, None] + ang_w[None, :, None, :]    # (u, v, h, w)
    ang = ang.reshape(H * W, H * W)
    return jnp.cos(ang).astype(jnp.float32), (-jnp.sin(ang)).astype(jnp.float32)


def _vp2_kernel(yx_ref, m_ref, cov_ref, ye_ref,
                *, noise_level, regularizer, inv_hw, tb, hw):
    yx = yx_ref[0]          # (2*TB, HW)  rows [0:TB] = y images, [TB:2TB] = x images
    M = m_ref[...]          # (HW, 2*HW)  = [Mc | Ms]

    # ---- fused forward FFT2 of y and x:  [y; x] @ [Mc | Ms]  (one matmul) ----
    f = jnp.dot(yx, M, preferred_element_type=jnp.float32)     # (2*TB, 2*HW)
    yr = f[:tb, :hw]
    yi = f[:tb, hw:]
    xr = f[tb:, :hw]
    xi = f[tb:, hw:]

    # denom = noise_level * |x_fft|^2 + regularizer
    denom = noise_level * (xr * xr + xi * xi) + regularizer
    inv_denom = pl.reciprocal(denom, approx=False)

    # k_fft = noise_level * conj(x_fft) / denom * y_fft
    kr = noise_level * (xr * yr + xi * yi) * inv_denom
    ki = noise_level * (xr * yi - xi * yr) * inv_denom

    # e = k_fft * x_fft
    er = kr * xr - ki * xi
    ei = kr * xi + ki * xr

    # ---- fused inverse transforms:  [er; ei; 1/denom] @ [Mc | Ms]  (one matmul) ----
    # ifft matrix = conj(M)/HW = (Mc - i*Ms)/HW; covariance input is real.
    lhs2 = jnp.concatenate([er, ei, inv_denom], axis=0)         # (3*TB, HW)
    g = jnp.dot(lhs2, M, preferred_element_type=jnp.float32)    # (3*TB, 2*HW)

    er_mc = g[:tb, :hw]
    er_ms = g[:tb, hw:]
    ei_mc = g[tb:2 * tb, :hw]
    ei_ms = g[tb:2 * tb, hw:]
    cov_mc = g[2 * tb:, :hw]

    # covariance = Re(ifft2(1/denom))
    cov_ref[0] = cov_mc * inv_hw

    # y_estimate = |ifft2(e)|
    zr = (er_mc + ei_ms) * inv_hw
    zi = (ei_mc - er_ms) * inv_hw
    ye_ref[0] = jnp.sqrt(zr * zr + zi * zi)


def vp_layer2_forward(y_pad, y_old_shape, k_shape, noise_level, regularizer, x):
    """Pallas implementation of vp_layer2.forward. Returns (k, covariance, y_estimate)."""
    N, C, H, W = y_pad.shape
    B = N * C
    HW = H * W

    xc = _center_crop(x, (H, W))                     # crop x to y_fft spatial size
    yf = y_pad.reshape(B, HW).astype(jnp.float32)
    xf = xc.reshape(B, HW).astype(jnp.float32)

    # Batch tiling: one grid step for small batches (single weight load / DMA);
    # split only when the batch is big enough to be worth sharding (v7x megacore).
    TB_MAX = 64
    G = max(1, -(-B // TB_MAX))
    TB = -(-B // G)
    TB = -(-TB // 8) * 8                             # sublane-aligned row tiles
    Bp = G * TB
    if Bp != B:
        pad = jnp.zeros((Bp - B, HW), jnp.float32)
        yf = jnp.concatenate([yf, pad], axis=0)
        xf = jnp.concatenate([xf, pad], axis=0)

    # Per grid block, stack the y rows on top of the x rows: (G, 2*TB, HW).
    yx = jnp.concatenate([yf.reshape(G, TB, HW), xf.reshape(G, TB, HW)], axis=1)

    # Combined 2-D DFT weight matrix [Mc | Ms]  (small-image path; 256x512 here).
    Mc, Ms = _dft2_mats(H, W)
    M = jnp.concatenate([Mc, Ms], axis=1)            # (HW, 2*HW)

    kernel = functools.partial(
        _vp2_kernel,
        noise_level=float(noise_level),
        regularizer=float(regularizer),
        inv_hw=1.0 / float(HW),
        tb=TB,
        hw=HW,
    )

    cov, ye = pl.pallas_call(
        kernel,
        out_shape=(jax.ShapeDtypeStruct((G, TB, HW), jnp.float32),
                   jax.ShapeDtypeStruct((G, TB, HW), jnp.float32)),
        grid_spec=pltpu.PrefetchScalarGridSpec(
            num_scalar_prefetch=0,
            grid=(G,),
            in_specs=[
                pl.BlockSpec((1, 2 * TB, HW), lambda g: (g, 0, 0)),  # [y; x] rows
                pl.BlockSpec((HW, 2 * HW), lambda g: (0, 0)),        # [Mc | Ms]
            ],
            out_specs=(pl.BlockSpec((1, TB, HW), lambda g: (g, 0, 0)),
                       pl.BlockSpec((1, TB, HW), lambda g: (g, 0, 0))),
        ),
        compiler_params=pltpu.CompilerParams(
            dimension_semantics=("parallel",),
            vmem_limit_bytes=64 * 1024 * 1024),
    )(yx, M)

    cov = cov.reshape(Bp, HW)[:B].reshape(N, C, H, W)
    ye = ye.reshape(Bp, HW)[:B].reshape(N, C, H, W)

    covariance = cov
    y_estimate = _center_crop(ye, y_old_shape)
    # The reference computes ifft2(k_fft).abs() and immediately overwrites it
    # with center_crop(x, k_shape); the dead compute is skipped.
    k = _center_crop(xc, k_shape)
    return k, covariance, y_estimate


def _reference(y_pad, y_old_shape, k_shape, noise_level, regularizer, x):
    """Pure-JAX (jnp.fft) reference mirroring the PyTorch forward."""
    y_fft = jnp.fft.fft2(y_pad)
    xc = _center_crop(x, (y_fft.shape[-2], y_fft.shape[-1]))
    x_fft = jnp.fft.fft2(xc)
    x_fft_abs = jnp.abs(x_fft) ** 2
    denom = noise_level * x_fft_abs + regularizer
    x_fft_inv = jnp.conj(x_fft) / denom
    k_fft = noise_level * x_fft_inv * y_fft
    covariance = jnp.fft.ifft2(1.0 / denom).real
    k = _center_crop(xc, k_shape)
    y_estimate = jnp.abs(jnp.fft.ifft2(k_fft * x_fft))
    y_estimate = _center_crop(y_estimate, y_old_shape)
    return k, covariance, y_estimate


if __name__ == "__main__":
    key = jax.random.PRNGKey(0)
    k1, k2 = jax.random.split(key)

    N, C, H, W = 2, 4, 16, 16
    y_pad = jax.random.normal(k1, (N, C, H, W), dtype=jnp.float32)
    x = jax.random.normal(k2, (N, C, 20, 20), dtype=jnp.float32)
    y_old_shape = (12, 12)
    k_shape = (8, 8)
    noise_level = 0.1
    regularizer = 0.05

    k_out, cov_out, ye_out = vp_layer2_forward(
        y_pad, y_old_shape, k_shape, noise_level, regularizer, x)
    jax.block_until_ready((k_out, cov_out, ye_out))

    # correctness check vs. jnp.fft reference
    k_ref, cov_ref, ye_ref = _reference(
        y_pad, y_old_shape, k_shape, noise_level, regularizer, x)
    assert k_out.shape == (N, C, *k_shape)
    assert cov_out.shape == (N, C, H, W)
    assert ye_out.shape == (N, C, *y_old_shape)
    np.testing.assert_allclose(np.asarray(k_out), np.asarray(k_ref), rtol=1e-3, atol=1e-3)
    np.testing.assert_allclose(np.asarray(cov_out), np.asarray(cov_ref), rtol=1e-3, atol=1e-3)
    np.testing.assert_allclose(np.asarray(ye_out), np.asarray(ye_ref), rtol=1e-3, atol=1e-3)

    print("KERNEL_OK")
</pallas_src>

<mosaic_0001>
module attributes {stable_mosaic.version = 11 : i64} {
  func.func @_vp2_kernel(%arg0: i32, %arg1: memref<1x16x256xf32, #tpu.memory_space<vmem>>, %arg2: memref<256x512xf32, #tpu.memory_space<vmem>>, %arg3: memref<1x8x256xf32, #tpu.memory_space<vmem>>, %arg4: memref<1x8x256xf32, #tpu.memory_space<vmem>>) attributes {dimension_semantics = [#tpu.dimension_semantics<parallel>], iteration_bounds = array<i64: 1>, scalar_prefetch = 0 : i64, scratch_operands = 0 : i64, tpu.core_type = #tpu.core_type<tc>, window_params = [{transform_indices = @transform_0, window_bounds = array<i64: 1, 16, 256>}, {pipeline_mode = #tpu.pipeline_mode<synchronous>, transform_indices = @transform_1, window_bounds = array<i64: 256, 512>}, {transform_indices = @transform_2, window_bounds = array<i64: 1, 8, 256>}, {transform_indices = @transform_3, window_bounds = array<i64: 1, 8, 256>}]} {
    %c0 = arith.constant 0 : index
    %c0_0 = arith.constant 0 : index
    %c0_1 = arith.constant 0 : index
    %0 = vector.load %arg1[%c0, %c0_0, %c0_1] : memref<1x16x256xf32, #tpu.memory_space<vmem>>, vector<1x16x256xf32>
    %1 = vector.shape_cast %0 : vector<1x16x256xf32> to vector<16x256xf32>
    %c0_2 = arith.constant 0 : index
    %c0_3 = arith.constant 0 : index
    %2 = vector.load %arg2[%c0_2, %c0_3] : memref<256x512xf32, #tpu.memory_space<vmem>>, vector<256x512xf32>
    %cst = arith.constant dense<0.000000e+00> : vector<16x512xf32>
    %3 = tpu.matmul %1, %2, %cst {dimension_numbers = #tpu.dot_dimension_numbers<[1], [0], [0], [1], [0, 0, 1, 1], [], []>} : vector<16x256xf32>, vector<256x512xf32>, vector<16x512xf32> -> vector<16x512xf32>
    %4 = vector.extract_strided_slice %3 {offsets = [0, 0], sizes = [8, 256], strides = [1, 1]} : vector<16x512xf32> to vector<8x256xf32>
    %5 = vector.extract_strided_slice %3 {offsets = [0, 256], sizes = [8, 256], strides = [1, 1]} : vector<16x512xf32> to vector<8x256xf32>
    %6 = vector.extract_strided_slice %3 {offsets = [8, 0], sizes = [8, 256], strides = [1, 1]} : vector<16x512xf32> to vector<8x256xf32>
    %7 = vector.extract_strided_slice %3 {offsets = [8, 256], sizes = [8, 256], strides = [1, 1]} : vector<16x512xf32> to vector<8x256xf32>
    %8 = arith.mulf %6, %6 : vector<8x256xf32>
    %9 = arith.mulf %7, %7 : vector<8x256xf32>
    %10 = arith.addf %8, %9 : vector<8x256xf32>
    %cst_4 = arith.constant 1.000000e-01 : f32
    %11 = vector.broadcast %cst_4 : f32 to vector<8x256xf32>
    %12 = arith.mulf %11, %10 : vector<8x256xf32>
    %cst_5 = arith.constant 5.000000e-02 : f32
    %13 = vector.broadcast %cst_5 : f32 to vector<8x256xf32>
    %14 = arith.addf %12, %13 : vector<8x256xf32>
    %15 = tpu.reciprocal %14 : vector<8x256xf32> -> vector<8x256xf32>
    %16 = arith.mulf %6, %4 : vector<8x256xf32>
    %17 = arith.mulf %7, %5 : vector<8x256xf32>
    %18 = arith.addf %16, %17 : vector<8x256xf32>
    %cst_6 = arith.constant 1.000000e-01 : f32
    %19 = vector.broadcast %cst_6 : f32 to vector<8x256xf32>
    %20 = arith.mulf %19, %18 : vector<8x256xf32>
    %21 = arith.mulf %20, %15 : vector<8x256xf32>
    %22 = arith.mulf %6, %5 : vector<8x256xf32>
    %23 = arith.mulf %7, %4 : vector<8x256xf32>
    %24 = arith.subf %22, %23 : vector<8x256xf32>
    %cst_7 = arith.constant 1.000000e-01 : f32
    %25 = vector.broadcast %cst_7 : f32 to vector<8x256xf32>
    %26 = arith.mulf %25, %24 : vector<8x256xf32>
    %27 = arith.mulf %26, %15 : vector<8x256xf32>
    %28 = arith.mulf %21, %6 : vector<8x256xf32>
    %29 = arith.mulf %27, %7 : vector<8x256xf32>
    %30 = arith.subf %28, %29 : vector<8x256xf32>
    %31 = arith.mulf %21, %7 : vector<8x256xf32>
    %32 = arith.mulf %27, %6 : vector<8x256xf32>
    %33 = arith.addf %31, %32 : vector<8x256xf32>
    %34 = tpu.concatenate %30, %33, %15 in 0 : vector<8x256xf32>, vector<8x256xf32>, vector<8x256xf32> -> vector<24x256xf32>
    %cst_8 = arith.constant dense<0.000000e+00> : vector<24x512xf32>
    %35 = tpu.matmul %34, %2, %cst_8 {dimension_numbers = #tpu.dot_dimension_numbers<[1], [0], [0], [1], [0, 0, 1, 1], [], []>} : vector<24x256xf32>, vector<256x512xf32>, vector<24x512xf32> -> vector<24x512xf32>
    %36 = vector.extract_strided_slice %35 {offsets = [0, 0], sizes = [8, 256], strides = [1, 1]} : vector<24x512xf32> to vector<8x256xf32>
    %37 = vector.extract_strided_slice %35 {offsets = [0, 256], sizes = [8, 256], strides = [1, 1]} : vector<24x512xf32> to vector<8x256xf32>
    %38 = vector.extract_strided_slice %35 {offsets = [8, 0], sizes = [8, 256], strides = [1, 1]} : vector<24x512xf32> to vector<8x256xf32>
    %39 = vector.extract_strided_slice %35 {offsets = [8, 256], sizes = [8, 256], strides = [1, 1]} : vector<24x512xf32> to vector<8x256xf32>
    %40 = vector.extract_strided_slice %35 {offsets = [16, 0], sizes = [8, 256], strides = [1, 1]} : vector<24x512xf32> to vector<8x256xf32>
    %cst_9 = arith.constant 3.906250e-03 : f32
    %41 = vector.broadcast %cst_9 : f32 to vector<8x256xf32>
    %42 = arith.mulf %40, %41 : vector<8x256xf32>
    %c0_10 = arith.constant 0 : index
    %c0_11 = arith.constant 0 : index
    %c0_12 = arith.constant 0 : index
    %43 = vector.load %arg3[%c0_10, %c0_11, %c0_12] : memref<1x8x256xf32, #tpu.memory_space<vmem>>, vector<1x8x256xf32>
    %44 = vector.shape_cast %43 : vector<1x8x256xf32> to vector<8x256xf32>
    %45 = vector.shape_cast %42 : vector<8x256xf32> to vector<1x8x256xf32>
    tpu.vector_store %arg3[%c0_10, %c0_11, %c0_12], %45 {strides = array<i32>} : memref<1x8x256xf32, #tpu.memory_space<vmem>>, vector<1x8x256xf32>,
    %46 = arith.addf %36, %39 : vector<8x256xf32>
    %cst_13 = arith.constant 3.906250e-03 : f32
    %47 = vector.broadcast %cst_13 : f32 to vector<8x256xf32>
    %48 = arith.mulf %46, %47 : vector<8x256xf32>
    %49 = arith.subf %38, %37 : vector<8x256xf32>
    %cst_14 = arith.constant 3.906250e-03 : f32
    %50 = vector.broadcast %cst_14 : f32 to vector<8x256xf32>
    %51 = arith.mulf %49, %50 : vector<8x256xf32>
    %52 = arith.mulf %48, %48 : vector<8x256xf32>
    %53 = arith.mulf %51, %51 : vector<8x256xf32>
    %54 = arith.addf %52, %53 : vector<8x256xf32>
    %55 = math.sqrt %54 : vector<8x256xf32>
    %c0_15 = arith.constant 0 : index
    %c0_16 = arith.constant 0 : index
    %c0_17 = arith.constant 0 : index
    %56 = vector.load %arg4[%c0_15, %c0_16, %c0_17] : memref<1x8x256xf32, #tpu.memory_space<vmem>>, vector<1x8x256xf32>
    %57 = vector.shape_cast %56 : vector<1x8x256xf32> to vector<8x256xf32>
    %58 = vector.shape_cast %55 : vector<8x256xf32> to vector<1x8x256xf32>
    tpu.vector_store %arg4[%c0_15, %c0_16, %c0_17], %58 {strides = array<i32>} : memref<1x8x256xf32, #tpu.memory_space<vmem>>, vector<1x8x256xf32>,
    return
  }
  func.func @transform_0(%arg0: i32) -> (i32, i32, i32) {
    %c0_i32 = arith.constant 0 : i32
    %c0_i32_0 = arith.constant 0 : i32
    %c0_i32_1 = arith.constant 0 : i32
    return %arg0, %c0_i32, %c0_i32_0 : i32, i32, i32
  }
  func.func @transform_1(%arg0: i32) -> (i32, i32) {
    %c0_i32 = arith.constant 0 : i32
    %c0_i32_0 = arith.constant 0 : i32
    %c0_i32_1 = arith.constant 0 : i32
    return %c0_i32, %c0_i32_0 : i32, i32
  }
  func.func @transform_2(%arg0: i32) -> (i32, i32, i32) {
    %c0_i32 = arith.constant 0 : i32
    %c0_i32_0 = arith.constant 0 : i32
    %c0_i32_1 = arith.constant 0 : i32
    return %arg0, %c0_i32, %c0_i32_0 : i32, i32, i32
  }
  func.func @transform_3(%arg0: i32) -> (i32, i32, i32) {
    %c0_i32 = arith.constant 0 : i32
    %c0_i32_0 = arith.constant 0 : i32
    %c0_i32_1 = arith.constant 0 : i32
    return %arg0, %c0_i32, %c0_i32_0 : i32, i32, i32
  }
}

</mosaic_0001>

<bundles_post_ra>
// kernel: tpu_custom_call.1
= control target key start
LH: loop header
LB: loop body
LE: loop exit
PB: predicated region body
PF: predicated region fallthrough
CT: control target
= control target key end

     0   :  { %9 = vsyncpa [#allocation3], 0  ;;  %s1187_s0 = inlined_call_operand.hbm [shape: f32[1,16,256], index: 0, kind: input, shape index: {}]   ;;  %s1188_s1 = inlined_call_operand.hbm [shape: f32[256,512], index: 1, kind: input, shape index: {}]   ;;  %s1189_s2 = inlined_call_operand.hbm [shape: f32[1,8,256], index: 2, kind: output, shape index: {0}]   ;;  %s1190_s3 = inlined_call_operand.hbm [shape: f32[1,8,256], index: 3, kind: output, shape index: {1}]  }
   0x1   :  { %10 = vsyncpa [#allocation6], 0 }
   0x2   :  { %11 = vsyncpa [#allocation4], 0 }
   0x3   :  { %12 = vsyncpa [#allocation9], 0  ;;  %s971_s12 = smov [#allocation2]   ;;  %s875_s16 = scalar_lea.hbm %s1187_s0, 512 }
   0x4   :  { %s18_s13 = sshll.u32 %s971_s12, 4  ;;  %p876_p0 = scmp.ne.s32.totalorder %s1187_s0, %s875_s16  ;;  %s19_s13 = int_to_ptr.vmem [resolvable:$true] %s18_s13 }
   0x5   :  { %p879_p1 = scmp.lt.u32.totalorder %s875_s16, %s1187_s0 }
   0x7   :  { %p881_p2 = pnand %p879_p1, %p876_p0 }
   0x9   :  { %884 = shalt.err (!%p881_p2)
}
   0xa   :  { %s885_s21 = scalar_lea.vmem %s19_s13, 512  ;;  %p890_p4 = scmp.lt.s32.totalorder %s19_s13, %s19_s13 }
   0xb   :  { %p886_p3 = scmp.ne.s32.totalorder %s19_s13, %s885_s21  ;;  %p891_p5 = scmp.lt.s32.totalorder %s885_s21, %s885_s21 }
   0xd   :  { %p892_p6 = por %p891_p5, %p890_p4 }
   0xf   :  { %p893_p7 = pnand %p892_p6, %p886_p3 }
  0x11   :  { %896 = shalt.err (!%p893_p7)
}
  0x12   :  { %s972_s22 = smov 256   ;;  %s973_s23 = smov 16  }
  0x13   :  { %24 = dma.hbm_to_vmem [thread:$0]  %s1187_s0, 512, %s19_s13, [#allocation3], %s972_s22, %s972_s22, %s973_s23  }
  0x14   :  { %s974_s26 = smov [#allocation5]   ;;  %s897_s30 = scalar_lea.hbm %s1188_s1, 16384 }
  0x15   :  { %s30_s27 = sshll.u32 %s974_s26, 4  ;;  %p898_p8 = scmp.ne.s32.totalorder %s1188_s1, %s897_s30  ;;  %s31_s27 = int_to_ptr.vmem [resolvable:$true] %s30_s27 }
  0x16   :  { %p901_p9 = scmp.lt.u32.totalorder %s897_s30, %s1188_s1 }
  0x18   :  { %p903_p10 = pnand %p901_p9, %p898_p8 }
  0x1a   :  { %906 = shalt.err (!%p903_p10)
}
  0x1b   :  { %s907_s8 = scalar_lea.vmem %s31_s27, 16384  ;;  %p912_p12 = scmp.lt.s32.totalorder %s31_s27, %s31_s27 }
  0x1c   :  { %p908_p11 = scmp.ne.s32.totalorder %s31_s27, %s907_s8  ;;  %p913_p13 = scmp.lt.s32.totalorder %s907_s8, %s907_s8 }
  0x1e   :  { %p914_p0 = por %p913_p13, %p912_p12 }
  0x20   :  { %p915_p1 = pnand %p914_p0, %p908_p11 }
  0x22   :  { %918 = shalt.err (!%p915_p1)
}
  0x23   :  { %s975_s0 = smov 512   ;;  %s976_s9 = smov 32  }
  0x24   :  { %36 = dma.hbm_to_vmem [thread:$0]  %s1188_s1, 16384, %s31_s27, [#allocation6], %s975_s0, %s975_s0, %s976_s9  }
  0x25   :  { %963 = dma.done.wait [#allocation3], 512  }
  0x26   :  { %964 = vsyncadd [#allocation3], 4294966784 }
  0x27   :  { %965 = dma.done.wait [#allocation6], 16384  }
  0x28   :  { %966 = vsyncadd [#allocation6], 4294950912  ;;  %v48_v0 = vld [vmem:[#allocation5 + $0x8] sm:$0xff]  ;;  %v47_v2 = vld [vmem:[#allocation5] sm:$0xff]  ;;  %s977_s1 = smov [#allocation7]  }
  0x29   :  { %v52_v1 = vld [vmem:[#allocation5 + $0x28] sm:$0xff]  ;;  %v51_v4 = vld [vmem:[#allocation5 + $0x20] sm:$0xff]  ;;  %s577_s12 = sshll.u32 %s977_s1, 4  ;;  %s578_s12 = int_to_ptr.vmem [resolvable:$true] %s577_s12 }
  0x2a   :  { %v601_v3 = vpack.c.bf16 %v52_v1, %v48_v0  ;;  %v56_v5 = vld [vmem:[#allocation5 + $0x48] sm:$0xff]  ;;  %v603_v7 = vpack.c.bf16 %v51_v4, %v47_v2  ;;  %v55_v9 = vld [vmem:[#allocation5 + $0x40] sm:$0xff]  ;;  %s919_s13 = scalar_lea.vmem %s578_s12, 256  ;;  %p924_p3 = scmp.lt.s32.totalorder %s578_s12, %s578_s12 }
  0x2b   :  { %v60_v6 = vld [vmem:[#allocation5 + $0x68] sm:$0xff]  ;;  %v59_v10 = vld [vmem:[#allocation5 + $0x60] sm:$0xff]  ;;  %p920_p2 = scmp.ne.s32.totalorder %s578_s12, %s919_s13  ;;  %p925_p4 = scmp.lt.s32.totalorder %s919_s13, %s919_s13 }
  0x2c   :  { %v605_v8 = vpack.c.bf16 %v60_v6, %v56_v5  ;;  %v64_v11 = vld [vmem:[#allocation5 + $0x88] sm:$0xff]  ;;  %602 = vmatprep.subr.bf16.mxu1 %v601_v3  ;;  %730 = vmatprep.subr.bf16.mxu0 %v601_v3  ;;  %v607_v13 = vpack.c.bf16 %v59_v10, %v55_v9  ;;  %v63_v15 = vld [vmem:[#allocation5 + $0x80] sm:$0xff] }
  0x2d   :  { %v68_v12 = vld [vmem:[#allocation5 + $0xa8] sm:$0xff]  ;;  %604 = vmatpush1.bf16.msra.mxu1 %v603_v7  ;;  %732 = vmatpush1.bf16.msra.mxu0 %v603_v7  ;;  %v67_v16 = vld [vmem:[#allocation5 + $0xa0] sm:$0xff]  ;;  %p926_p5 = por %p925_p4, %p924_p3 }
  0x2e   :  { %606 = vmatprep.subr.bf16.mxu1 %v605_v8  ;;  %v609_v14 = vpack.c.bf16 %v68_v12, %v64_v11  ;;  %734 = vmatprep.subr.bf16.mxu0 %v605_v8  ;;  %v72_v17 = vld [vmem:[#allocation5 + $0xc8] sm:$0xff]  ;;  %v611_v19 = vpack.c.bf16 %v67_v16, %v63_v15  ;;  %v71_v21 = vld [vmem:[#allocation5 + $0xc0] sm:$0xff] }
  0x2f   :  { %v76_v18 = vld [vmem:[#allocation5 + $0xe8] sm:$0xff]  ;;  %v75_v22 = vld [vmem:[#allocation5 + $0xe0] sm:$0xff]  ;;  %p927_p6 = pnand %p926_p5, %p920_p2 }
  0x30   :  { %v613_v20 = vpack.c.bf16 %v76_v18, %v72_v17  ;;  %v80_v23 = vld [vmem:[#allocation5 + $0x108] sm:$0xff]  ;;  %v615_v25 = vpack.c.bf16 %v75_v22, %v71_v21  ;;  %v79_v27 = vld [vmem:[#allocation5 + $0x100] sm:$0xff] }
  0x31   :  { %608 = vmatpush1.bf16.msra.mxu1 %v607_v13  ;;  %736 = vmatpush1.bf16.msra.mxu0 %v607_v13  ;;  %v84_v24 = vld [vmem:[#allocation5 + $0x128] sm:$0xff]  ;;  %v83_v28 = vld [vmem:[#allocation5 + $0x120] sm:$0xff] }
  0x32   :  { %610 = vmatprep.subr.bf16.mxu1 %v609_v14  ;;  %738 = vmatprep.subr.bf16.mxu0 %v609_v14  ;;  %v617_v26 = vpack.c.bf16 %v84_v24, %v80_v23  ;;  %v88_v29 = vld [vmem:[#allocation5 + $0x148] sm:$0xff]  ;;  %v619_v31 = vpack.c.bf16 %v83_v28, %v79_v27  ;;  %v87_v33 = vld [vmem:[#allocation5 + $0x140] sm:$0xff] }
  0x33   :  { %v92_v30 = vld [vmem:[#allocation5 + $0x168] sm:$0xff]  ;;  %v91_v34 = vld [vmem:[#allocation5 + $0x160] sm:$0xff] }
  0x34   :  { %v621_v32 = vpack.c.bf16 %v92_v30, %v88_v29  ;;  %v96_v35 = vld [vmem:[#allocation5 + $0x188] sm:$0xff]  ;;  %v623_v37 = vpack.c.bf16 %v91_v34, %v87_v33  ;;  %v95_v39 = vld [vmem:[#allocation5 + $0x180] sm:$0xff]  ;;  %v54_v33 = vld [vmem:[#allocation5 + $0x38] sm:$0xff] }
  0x35   :  { %612 = vmatpush1.bf16.msra.mxu1 %v611_v19  ;;  %740 = vmatpush1.bf16.msra.mxu0 %v611_v19  ;;  %v100_v36 = vld [vmem:[#allocation5 + $0x1a8] sm:$0xff]  ;;  %v99_v40 = vld [vmem:[#allocation5 + $0x1a0] sm:$0xff] }
  0x36   :  { %614 = vmatprep.subr.bf16.mxu1 %v613_v20  ;;  %742 = vmatprep.subr.bf16.mxu0 %v613_v20  ;;  %v625_v38 = vpack.c.bf16 %v100_v36, %v96_v35  ;;  %v1023_v41 = vld [vmem:[#allocation2 + $0x8] sm:$0xff]  ;;  %v627_v44 = vpack.c.bf16 %v99_v40, %v95_v39  ;;  %v103_v46 = vld [vmem:[#allocation5 + $0x1c0] sm:$0xff]  ;;  %v49_v36 = vld [vmem:[#allocation5 + $0x10] sm:$0xff] }
  0x37   :  { %v104_v42 = vld [vmem:[#allocation5 + $0x1c8] sm:$0xff]  ;;  %239 = vmatprep.mubr.f32.mxu1 %v1023_v41  ;;  %v107_v47 = vld [vmem:[#allocation5 + $0x1e0] sm:$0xff]  ;;  %v62_v39 = vld [vmem:[#allocation5 + $0x78] sm:$0xff] }
  0x38   :  { %v108_v43 = vld [vmem:[#allocation5 + $0x1e8] sm:$0xff]  ;;  %v631_v50 = vpack.c.bf16 %v107_v47, %v103_v46  ;;  %v111_v52 = vld [vmem:[#allocation5 + $0x200] sm:$0xff]  ;;  %v61_v46 = vld [vmem:[#allocation5 + $0x70] sm:$0xff] }
  0x39   :  { %616 = vmatpush1.bf16.msra.mxu1 %v615_v25  ;;  %744 = vmatpush1.bf16.msra.mxu0 %v615_v25  ;;  %v629_v45 = vpack.c.bf16 %v108_v43, %v104_v42  ;;  %v112_v48 = vld [vmem:[#allocation5 + $0x208] sm:$0xff]  ;;  %v115_v53 = vld [vmem:[#allocation5 + $0x220] sm:$0xff]  ;;  %v1030_v43 = vld [vmem:[#allocation2 + $0x18] sm:$0xff] }
  0x3a   :  { %618 = vmatprep.subr.bf16.mxu1 %v617_v26  ;;  %746 = vmatprep.subr.bf16.mxu0 %v617_v26  ;;  %v116_v49 = vld [vmem:[#allocation5 + $0x228] sm:$0xff]  ;;  %v635_v56 = vpack.c.bf16 %v115_v53, %v111_v52  ;;  %v119_v58 = vld [vmem:[#allocation5 + $0x240] sm:$0xff]  ;;  %v66_v47 = vld [vmem:[#allocation5 + $0x98] sm:$0xff] }
  0x3b   :  { %v633_v51 = vpack.c.bf16 %v116_v49, %v112_v48  ;;  %v120_v54 = vld [vmem:[#allocation5 + $0x248] sm:$0xff]  ;;  %v123_v59 = vld [vmem:[#allocation5 + $0x260] sm:$0xff]  ;;  %v70_v48 = vld [vmem:[#allocation5 + $0xb8] sm:$0xff] }
  0x3c   :  { %v124_v55 = vld [vmem:[#allocation5 + $0x268] sm:$0xff]  ;;  %v639_v62 = vpack.c.bf16 %v123_v59, %v119_v58  ;;  %v127_v0 = vld [vmem:[#allocation5 + $0x280] sm:$0xff]  ;;  %v1037_v49 = vld [vmem:[#allocation2 + $0x10] sm:$0xff] }
  0x3d   :  { %620 = vmatpush1.bf16.msra.mxu1 %v619_v31  ;;  %748 = vmatpush1.bf16.msra.mxu0 %v619_v31  ;;  %v637_v57 = vpack.c.bf16 %v124_v55, %v120_v54  ;;  %v128_v60 = vld [vmem:[#allocation5 + $0x288] sm:$0xff]  ;;  %v131_v1 = vld [vmem:[#allocation5 + $0x2a0] sm:$0xff]  ;;  %v65_v52 = vld [vmem:[#allocation5 + $0x90] sm:$0xff] }
  0x3e   :  { %622 = vmatprep.subr.bf16.mxu1 %v621_v32  ;;  %750 = vmatprep.subr.bf16.mxu0 %v621_v32  ;;  %v132_v61 = vld [vmem:[#allocation5 + $0x2a8] sm:$0xff]  ;;  %v643_v4 = vpack.c.bf16 %v131_v1, %v127_v0  ;;  %v135_v6 = vld [vmem:[#allocation5 + $0x2c0] sm:$0xff]  ;;  %v50_v32 = vld [vmem:[#allocation5 + $0x18] sm:$0xff] }
  0x3f   :  { %v641_v63 = vpack.c.bf16 %v132_v61, %v128_v60  ;;  %v136_v2 = vld [vmem:[#allocation5 + $0x2c8] sm:$0xff]  ;;  %v139_v7 = vld [vmem:[#allocation5 + $0x2e0] sm:$0xff]  ;;  %v665_v35 = vpack.c.bf16 %v54_v33, %v50_v32  ;;  %v69_v53 = vld [vmem:[#allocation5 + $0xb0] sm:$0xff] }
  0x40   :  { %v140_v3 = vld [vmem:[#allocation5 + $0x2e8] sm:$0xff]  ;;  %v647_v10 = vpack.c.bf16 %v139_v7, %v135_v6  ;;  %v143_v12 = vld [vmem:[#allocation5 + $0x300] sm:$0xff]  ;;  %v74_v54 = vld [vmem:[#allocation5 + $0xd8] sm:$0xff] }
  0x41   :  { %624 = vmatpush1.bf16.msra.mxu1 %v623_v37  ;;  %752 = vmatpush1.bf16.msra.mxu0 %v623_v37  ;;  %v645_v5 = vpack.c.bf16 %v140_v3, %v136_v2  ;;  %v144_v8 = vld [vmem:[#allocation5 + $0x308] sm:$0xff]  ;;  %v147_v13 = vld [vmem:[#allocation5 + $0x320] sm:$0xff]  ;;  %v53_v37 = vld [vmem:[#allocation5 + $0x30] sm:$0xff] }
  0x42   :  { %626 = vmatprep.subr.bf16.mxu1 %v625_v38  ;;  %754 = vmatprep.subr.bf16.mxu0 %v625_v38  ;;  %v148_v9 = vld [vmem:[#allocation5 + $0x328] sm:$0xff]  ;;  %v651_v16 = vpack.c.bf16 %v147_v13, %v143_v12  ;;  %v151_v18 = vld [vmem:[#allocation5 + $0x340] sm:$0xff]  ;;  %v58_v38 = vld [vmem:[#allocation5 + $0x58] sm:$0xff]  ;;  %v1028_v42 = vpack.c.bf16 %v53_v37, %v49_v36 }
  0x43   :  { %v649_v11 = vpack.c.bf16 %v148_v9, %v144_v8  ;;  %v152_v14 = vld [vmem:[#allocation5 + $0x348] sm:$0xff]  ;;  %v155_v19 = vld [vmem:[#allocation5 + $0x360] sm:$0xff]  ;;  %v78_v55 = vld [vmem:[#allocation5 + $0xf8] sm:$0xff] }
  0x44   :  { %v156_v15 = vld [vmem:[#allocation5 + $0x368] sm:$0xff]  ;;  %v655_v22 = vpack.c.bf16 %v155_v19, %v151_v18  ;;  %v159_v24 = vld [vmem:[#allocation5 + $0x380] sm:$0xff]  ;;  %v73_v58 = vld [vmem:[#allocation5 + $0xd0] sm:$0xff] }
  0x45   :  { %628 = vmatpush1.bf16.msra.mxu1 %v627_v44  ;;  %756 = vmatpush1.bf16.msra.mxu0 %v627_v44  ;;  %v653_v17 = vpack.c.bf16 %v156_v15, %v152_v14  ;;  %v160_v20 = vld [vmem:[#allocation5 + $0x388] sm:$0xff]  ;;  %v163_v25 = vld [vmem:[#allocation5 + $0x3a0] sm:$0xff]  ;;  %v1032_v44 = vpack.c.bf16 %v62_v39, %v58_v38  ;;  %v77_v59 = vld [vmem:[#allocation5 + $0xf0] sm:$0xff] }
  0x46   :  { %630 = vmatprep.subr.bf16.mxu1 %v629_v45  ;;  %758 = vmatprep.subr.bf16.mxu0 %v629_v45  ;;  %v164_v21 = vld [vmem:[#allocation5 + $0x3a8] sm:$0xff]  ;;  %v659_v28 = vpack.c.bf16 %v163_v25, %v159_v24  ;;  %v167_v30 = vld [vmem:[#allocation5 + $0x3c0] sm:$0xff]  ;;  %v57_v45 = vld [vmem:[#allocation5 + $0x50] sm:$0xff] }
  0x47   :  { %v657_v23 = vpack.c.bf16 %v164_v21, %v160_v20  ;;  %v168_v26 = vld [vmem:[#allocation5 + $0x3c8] sm:$0xff]  ;;  %v171_v31 = vld [vmem:[#allocation5 + $0x3e0] sm:$0xff]  ;;  %v82_v60 = vld [vmem:[#allocation5 + $0x118] sm:$0xff] }
  0x48   :  { %v172_v27 = vld [vmem:[#allocation5 + $0x3e8] sm:$0xff]  ;;  %v663_v34 = vpack.c.bf16 %v171_v31, %v167_v30  ;;  %v1026_v40 = vld [vmem:[#allocation2] sm:$0xff]  ;;  %v86_v61 = vld [vmem:[#allocation5 + $0x138] sm:$0xff] }
  0x49   :  { %632 = vmatpush1.bf16.msra.mxu1 %v631_v50  ;;  %760 = vmatpush1.bf16.msra.mxu0 %v631_v50  ;;  %v661_v29 = vpack.c.bf16 %v172_v27, %v168_v26  ;;  %v1039_v50 = vpack.c.bf16 %v61_v46, %v57_v45  ;;  %v81_v0 = vld [vmem:[#allocation5 + $0x110] sm:$0xff]  ;;  %v90_v2 = vld [vmem:[#allocation5 + $0x158] sm:$0xff] }
  0x4a   :  { %634 = vmatprep.subr.bf16.mxu1 %v633_v51  ;;  %762 = vmatprep.subr.bf16.mxu0 %v633_v51  ;;  %v1042_v51 = vpack.c.bf16 %v70_v48, %v66_v47  ;;  %v85_v1 = vld [vmem:[#allocation5 + $0x130] sm:$0xff]  ;;  %v98_v7 = vld [vmem:[#allocation5 + $0x198] sm:$0xff] }
  0x4b   :  { %v1059_v3 = vpack.c.bf16 %v85_v1, %v81_v0  ;;  %v93_v6 = vld [vmem:[#allocation5 + $0x170] sm:$0xff]  ;;  %v102_v8 = vld [vmem:[#allocation5 + $0x1b8] sm:$0xff] }
  0x4c   :  { %v101_v12 = vld [vmem:[#allocation5 + $0x1b0] sm:$0xff]  ;;  %v106_v13 = vld [vmem:[#allocation5 + $0x1d8] sm:$0xff] }
  0x4d   :  { %636 = vmatpush1.bf16.msra.mxu1 %v635_v56  ;;  %764 = vmatpush1.bf16.msra.mxu0 %v635_v56  ;;  %v1046_v56 = vpack.c.bf16 %v69_v53, %v65_v52  ;;  %v110_v14 = vld [vmem:[#allocation5 + $0x1f8] sm:$0xff]  ;;  %v109_v18 = vld [vmem:[#allocation5 + $0x1f0] sm:$0xff] }
  0x4e   :  { %638 = vmatprep.subr.bf16.mxu1 %v637_v57  ;;  %766 = vmatprep.subr.bf16.mxu0 %v637_v57  ;;  %v1050_v57 = vpack.c.bf16 %v78_v55, %v74_v54  ;;  %v114_v19 = vld [vmem:[#allocation5 + $0x218] sm:$0xff]  ;;  %v117_v24 = vld [vmem:[#allocation5 + $0x230] sm:$0xff] }
  0x4f   :  { %v118_v20 = vld [vmem:[#allocation5 + $0x238] sm:$0xff]  ;;  %v125_v30 = vld [vmem:[#allocation5 + $0x270] sm:$0xff] }
  0x50   :  { %v122_v25 = vld [vmem:[#allocation5 + $0x258] sm:$0xff]  ;;  %v133_v36 = vld [vmem:[#allocation5 + $0x2b0] sm:$0xff] }
  0x51   :  { %640 = vmatpush1.bf16.msra.mxu1 %v639_v62  ;;  %768 = vmatpush1.bf16.msra.mxu0 %v639_v62  ;;  %v1053_v62 = vpack.c.bf16 %v77_v59, %v73_v58  ;;  %v126_v26 = vld [vmem:[#allocation5 + $0x278] sm:$0xff]  ;;  %v137_v46 = vld [vmem:[#allocation5 + $0x2d0] sm:$0xff] }
  0x52   :  { %642 = vmatprep.subr.bf16.mxu1 %v641_v63  ;;  %770 = vmatprep.subr.bf16.mxu0 %v641_v63  ;;  %v1056_v63 = vpack.c.bf16 %v86_v61, %v82_v60  ;;  %v130_v31 = vld [vmem:[#allocation5 + $0x298] sm:$0xff]  ;;  %v141_v47 = vld [vmem:[#allocation5 + $0x2f0] sm:$0xff] }
  0x53   :  { %v134_v32 = vld [vmem:[#allocation5 + $0x2b8] sm:$0xff]  ;;  %v1101_v53 = vpack.c.bf16 %v141_v47, %v137_v46  ;;  %v145_v55 = vld [vmem:[#allocation5 + $0x310] sm:$0xff] }
  0x54   :  { %v138_v37 = vld [vmem:[#allocation5 + $0x2d8] sm:$0xff]  ;;  %v149_v58 = vld [vmem:[#allocation5 + $0x330] sm:$0xff] }
  0x55   :  { %644 = vmatpush1.bf16.msra.mxu1 %v643_v4  ;;  %772 = vmatpush1.bf16.msra.mxu0 %v643_v4  ;;  %v142_v38 = vld [vmem:[#allocation5 + $0x2f8] sm:$0xff]  ;;  %v1107_v61 = vpack.c.bf16 %v149_v58, %v145_v55  ;;  %v153_v1 = vld [vmem:[#allocation5 + $0x350] sm:$0xff] }
  0x56   :  { %646 = vmatprep.subr.bf16.mxu1 %v645_v5  ;;  %774 = vmatprep.subr.bf16.mxu0 %v645_v5  ;;  %v89_v5 = vld [vmem:[#allocation5 + $0x150] sm:$0xff]  ;;  %v1098_v45 = vpack.c.bf16 %v142_v38, %v138_v37  ;;  %v146_v48 = vld [vmem:[#allocation5 + $0x318] sm:$0xff] }
  0x57   :  { %v1065_v9 = vpack.c.bf16 %v93_v6, %v89_v5  ;;  %v150_v52 = vld [vmem:[#allocation5 + $0x338] sm:$0xff] }
  0x58   :  { %v1104_v54 = vpack.c.bf16 %v150_v52, %v146_v48  ;;  %v154_v59 = vld [vmem:[#allocation5 + $0x358] sm:$0xff] }
  0x59   :  { %648 = vmatpush1.bf16.msra.mxu1 %v647_v10  ;;  %776 = vmatpush1.bf16.msra.mxu0 %v647_v10  ;;  %v1068_v10 = vpack.c.bf16 %v102_v8, %v98_v7  ;;  %v158_v60 = vld [vmem:[#allocation5 + $0x378] sm:$0xff]  ;;  %v161_v8 = vld [vmem:[#allocation5 + $0x390] sm:$0xff] }
  0x5a   :  { %650 = vmatprep.subr.bf16.mxu1 %v649_v11  ;;  %778 = vmatprep.subr.bf16.mxu0 %v649_v11  ;;  %v97_v11 = vld [vmem:[#allocation5 + $0x190] sm:$0xff]  ;;  %v1110_v0 = vpack.c.bf16 %v158_v60, %v154_v59  ;;  %v166_v5 = vld [vmem:[#allocation5 + $0x3b8] sm:$0xff] }
  0x5b   :  { %v1071_v15 = vpack.c.bf16 %v101_v12, %v97_v11  ;;  %v165_v11 = vld [vmem:[#allocation5 + $0x3b0] sm:$0xff]  ;;  %v170_v12 = vld [vmem:[#allocation5 + $0x3d8] sm:$0xff] }
  0x5d   :  { %652 = vmatpush1.bf16.msra.mxu1 %v651_v16  ;;  %780 = vmatpush1.bf16.msra.mxu0 %v651_v16  ;;  %v1074_v16 = vpack.c.bf16 %v110_v14, %v106_v13  ;;  %v174_v13 = vld [vmem:[#allocation5 + $0x3f8] sm:$0xff]  ;;  %v1119_v14 = vpack.c.bf16 %v165_v11, %v161_v8 }
  0x5e   :  { %654 = vmatprep.subr.bf16.mxu1 %v653_v17  ;;  %782 = vmatprep.subr.bf16.mxu0 %v653_v17  ;;  %v105_v17 = vld [vmem:[#allocation5 + $0x1d0] sm:$0xff] }
  0x5f   :  { %v1077_v21 = vpack.c.bf16 %v109_v18, %v105_v17  ;;  %v1122_v17 = vpack.c.bf16 %v174_v13, %v170_v12  ;;  %v169_v18 = vld [vmem:[#allocation5 + $0x3d0] sm:$0xff] }
  0x61   :  { %656 = vmatpush1.bf16.msra.mxu1 %v655_v22  ;;  %784 = vmatpush1.bf16.msra.mxu0 %v655_v22  ;;  %v1080_v22 = vpack.c.bf16 %v118_v20, %v114_v19  ;;  %v173_v19 = vld [vmem:[#allocation5 + $0x3f0] sm:$0xff] }
  0x62   :  { %658 = vmatprep.subr.bf16.mxu1 %v657_v23  ;;  %786 = vmatprep.subr.bf16.mxu0 %v657_v23  ;;  %v113_v23 = vld [vmem:[#allocation5 + $0x210] sm:$0xff]  ;;  %v1125_v20 = vpack.c.bf16 %v173_v19, %v169_v18 }
  0x63   :  { %v1083_v27 = vpack.c.bf16 %v117_v24, %v113_v23 }
  0x64   :  { %1192 = vst [vmem:[#allocation14_spill] sm:$0xff] %v1125_v20 }
  0x65   :  { %660 = vmatpush1.bf16.msra.mxu1 %v659_v28  ;;  %788 = vmatpush1.bf16.msra.mxu0 %v659_v28  ;;  %v1086_v28 = vpack.c.bf16 %v126_v26, %v122_v25 }
  0x66   :  { %662 = vmatprep.subr.bf16.mxu1 %v661_v29  ;;  %790 = vmatprep.subr.bf16.mxu0 %v661_v29  ;;  %v121_v29 = vld [vmem:[#allocation5 + $0x250] sm:$0xff] }
  0x67   :  { %v1089_v33 = vpack.c.bf16 %v125_v30, %v121_v29 }
  0x69   :  { %664 = vmatpush1.bf16.msra.mxu1 %v663_v34  ;;  %792 = vmatpush1.bf16.msra.mxu0 %v663_v34  ;;  %v1092_v34 = vpack.c.bf16 %v134_v32, %v130_v31 }
  0x6a   :  { %666 = vmatprep.subr.bf16.mxu1 %v665_v35  ;;  %794 = vmatprep.subr.bf16.mxu0 %v665_v35  ;;  %v129_v35 = vld [vmem:[#allocation5 + $0x290] sm:$0xff] }
  0x6b   :  { %v1095_v39 = vpack.c.bf16 %v133_v36, %v129_v35 }
  0x6c   :  { %240 = vmatmul.mubr.f32.vlgmr.msra.gmra.mrb[0].mxu1 %v1026_v40 }
  0x6d   :  { %668 = vmatpush1.bf16.msra.mxu1 %v1028_v42  ;;  %245 = vmatprep.mubr.f32.mxu1 %v1030_v43 }
  0x6e   :  { %670 = vmatprep.subr.bf16.mxu1 %v1032_v44 }
  0x70   :  { %246 = vmatmul.mubr.f32.gmra.mrb[2].mxu1 %v1037_v49 }
  0x71   :  { %672 = vmatpush1.bf16.msra.mxu1 %v1039_v50  ;;  %316 = vmatprep.mubr.f32.mxu1 %v1023_v41  ;;  %v94_v41 = vld [vmem:[#allocation5 + $0x178] sm:$0xff] }
  0x72   :  { %674 = vmatprep.subr.bf16.mxu1 %v1042_v51  ;;  %v1062_v4 = vpack.c.bf16 %v94_v41, %v90_v2  ;;  %v157_v2 = vld [vmem:[#allocation5 + $0x370] sm:$0xff]  ;;  %v162_v41 = vld [vmem:[#allocation5 + $0x398] sm:$0xff] }
  0x73   :  { %v1113_v6 = vpack.c.bf16 %v157_v2, %v153_v1  ;;  %v1116_v7 = vpack.c.bf16 %v166_v5, %v162_v41 }
  0x75   :  { %676 = vmatpush1.bf16.msra.mxu1 %v1046_v56 }
  0x76   :  { %678 = vmatprep.subr.bf16.mxu1 %v1050_v57 }
  0x79   :  { %680 = vmatpush1.bf16.msra.mxu1 %v1053_v62 }
  0x7a   :  { %682 = vmatprep.subr.bf16.mxu1 %v1056_v63 }
  0x7d   :  { %684 = vmatpush1.bf16.msra.mxu1 %v1059_v3 }
  0x7e   :  { %686 = vmatprep.subr.bf16.mxu1 %v1062_v4 }
  0x81   :  { %688 = vmatpush1.bf16.msra.mxu1 %v1065_v9 }
  0x82   :  { %690 = vmatprep.subr.bf16.mxu1 %v1068_v10 }
  0x85   :  { %692 = vmatpush1.bf16.msra.mxu1 %v1071_v15 }
  0x86   :  { %694 = vmatprep.subr.bf16.mxu1 %v1074_v16 }
  0x89   :  { %696 = vmatpush1.bf16.msra.mxu1 %v1077_v21 }
  0x8a   :  { %698 = vmatprep.subr.bf16.mxu1 %v1080_v22 }
  0x8d   :  { %700 = vmatpush1.bf16.msra.mxu1 %v1083_v27 }
  0x8e   :  { %702 = vmatprep.subr.bf16.mxu1 %v1086_v28 }
  0x91   :  { %704 = vmatpush1.bf16.msra.mxu1 %v1089_v33 }
  0x92   :  { %706 = vmatprep.subr.bf16.mxu1 %v1092_v34 }
  0x95   :  { %708 = vmatpush1.bf16.msra.mxu1 %v1095_v39 }
  0x96   :  { %710 = vmatprep.subr.bf16.mxu1 %v1098_v45 }
  0x99   :  { %712 = vmatpush1.bf16.msra.mxu1 %v1101_v53 }
  0x9a   :  { %714 = vmatprep.subr.bf16.mxu1 %v1104_v54 }
  0x9d   :  { %716 = vmatpush1.bf16.msra.mxu1 %v1107_v61 }
  0x9e   :  { %718 = vmatprep.subr.bf16.mxu1 %v1110_v0 }
  0xa1   :  { %720 = vmatpush1.bf16.msra.mxu1 %v1113_v6 }
  0xa2   :  { %722 = vmatprep.subr.bf16.mxu1 %v1116_v7 }
  0xa5   :  { %724 = vmatpush1.bf16.msra.mxu1 %v1119_v14 }
  0xa6   :  { %726 = vmatprep.subr.bf16.mxu1 %v1122_v17 }
  0xa9   :  { %728 = vmatpush1.bf16.msra.mxu1 %v1125_v20 }
  0xac   :  { %317 = vmatmul.mubr.f32.vlgmr.msra.gmra.mrb[4].mxu1 %v1026_v40 }
  0xad   :  { %322 = vmatprep.mubr.f32.mxu1 %v1030_v43 }
  0xb0   :  { %323 = vmatmul.mubr.f32.gmra.mrb[6].mxu1 %v1037_v49 }
 0x13f   :  { %v241_v23 = vpop.f32.mrb[0].mxu1 }
 0x140   :  { %v243_v24 = vpop.f32.mrb[1].mxu1 }
 0x143   :  { %v247_v25 = vpop.f32.mrb[2].mxu1 }
 0x144   :  { %v341_v26 = vmul.f32 %v247_v25, %v241_v23  ;;  %v249_v29 = vpop.f32.mrb[3].mxu1  ;;  %v329_v38 = vmul.f32 %v247_v25, %v247_v25 }
 0x145   :  { %v342_v30 = vmul.f32 %v249_v29, %v243_v24  ;;  %v330_v52 = vmul.f32 %v249_v29, %v249_v29 }
 0x17f   :  { %v318_v31 = vpop.f32.mrb[4].mxu1 }
 0x180   :  { %v351_v32 = vmul.f32 %v318_v31, %v247_v25  ;;  %v320_v35 = vpop.f32.mrb[5].mxu1 }
 0x181   :  { %v352_v36 = vmul.f32 %v320_v35, %v249_v29 }
 0x183   :  { %v324_v37 = vpop.f32.mrb[6].mxu1 }
 0x184   :  { %v331_v46 = vmul.f32 %v324_v37, %v324_v37  ;;  %v343_v47 = vmul.f32 %v324_v37, %v318_v31  ;;  %v353_v48 = vmul.f32 %v324_v37, %v241_v23  ;;  %v326_v40 = vpop.f32.mrb[7].mxu1 }
 0x185   :  { %v332_v43 = vmul.f32 %v326_v40, %v326_v40  ;;  %v344_v55 = vmul.f32 %v326_v40, %v320_v35  ;;  %v354_v49 = vmul.f32 %v326_v40, %v243_v24 }
 0x186   :  { %v333_v58 = vadd.f32 %v331_v46, %v329_v38  ;;  %v345_v59 = vadd.f32 %v343_v47, %v341_v26  ;;  %v355_v60 = vsub.f32 %v351_v32, %v353_v48 }
 0x187   :  { %v334_v1 = vadd.f32 %v332_v43, %v330_v52  ;;  %v346_v2 = vadd.f32 %v344_v55, %v342_v30  ;;  %v356_v41 = vsub.f32 %v352_v36, %v354_v49 }
 0x188   :  { %v335_v5 = vmul.f32 0.1, %v333_v58  ;;  %v347_v13 = vmul.f32 0.1, %v345_v59  ;;  %v357_v18 = vmul.f32 0.1, %v355_v60 }
 0x189   :  { %v336_v8 = vmul.f32 0.1, %v334_v1  ;;  %v348_v23 = vmul.f32 0.1, %v346_v2  ;;  %v358_v31 = vmul.f32 0.1, %v356_v41 }
 0x18a   :  { %v337_v11 = vadd.f32 0.05, %v335_v5 }
 0x18b   :  { %v338_v12 = vadd.f32 0.05, %v336_v8 }
 0x18c   :  { %867 = vrcp.f32 %v337_v11 }
 0x18d   :  { %869 = vrcp.f32 %v338_v12 }
 0x196   :  { %v868_v19 = vpop.eup %867 }
 0x197   :  { %v870_v20 = vpop.eup %869  ;;  %v349_v35 = vmul.f32 %v868_v19, %v347_v13  ;;  %v359_v24 = vmul.f32 %v868_v19, %v357_v18 }
 0x198   :  { %v350_v38 = vmul.f32 %v870_v20, %v348_v23  ;;  %v360_v26 = vmul.f32 %v870_v20, %v358_v31 }
 0x199   :  { %v361_v32 = vmul.f32 %v349_v35, %v247_v25  ;;  %v363_v46 = vmul.f32 %v359_v24, %v324_v37  ;;  %v367_v30 = vmul.f32 %v349_v35, %v324_v37  ;;  %v369_v36 = vmul.f32 %v359_v24, %v247_v25 }
 0x19a   :  { %v362_v47 = vmul.f32 %v350_v38, %v249_v29  ;;  %v364_v48 = vmul.f32 %v360_v26, %v326_v40  ;;  %v368_v52 = vmul.f32 %v350_v38, %v326_v40  ;;  %v370_v43 = vmul.f32 %v360_v26, %v249_v29 }
 0x19b   :  { %v365_v55 = vsub.f32 %v361_v32, %v363_v46  ;;  %v371_v49 = vadd.f32 %v369_v36, %v367_v30 }
 0x19c   :  { %v366_v58 = vsub.f32 %v362_v47, %v364_v48  ;;  %v372_v59 = vadd.f32 %v370_v43, %v368_v52 }
 0x19e   :  { %437 = vmatprep.mubr.f32.mxu0 %v366_v58 }
 0x19f   :  { %438 = vmatmul.mubr.f32.vlgmr.msra.gmra.mrb[0].mxu0 %v365_v55 }
 0x1a0   :  { %796 = vmatpush1.bf16.msra.mxu0 %v1028_v42  ;;  %443 = vmatprep.mubr.f32.mxu0 %v372_v59  ;;  %v1193_v42 = vld [vmem:[#allocation14_spill] sm:$0xff] }
 0x1a1   :  { %798 = vmatprep.subr.bf16.mxu0 %v1032_v44 }
 0x1a3   :  { %444 = vmatmul.mubr.f32.gmra.mrb[2].mxu0 %v371_v49 }
 0x1a4   :  { %800 = vmatpush1.bf16.msra.mxu0 %v1039_v50  ;;  %449 = vmatprep.mubr.f32.mxu0 %v870_v20 }
 0x1a5   :  { %802 = vmatprep.subr.bf16.mxu0 %v1042_v51 }
 0x1a7   :  { %450 = vmatmul.mubr.f32.gmra.mrb[4].mxu0 %v868_v19 }
 0x1a8   :  { %804 = vmatpush1.bf16.msra.mxu0 %v1046_v56  ;;  %520 = vmatprep.mubr.f32.mxu0 %v366_v58 }
 0x1a9   :  { %806 = vmatprep.subr.bf16.mxu0 %v1050_v57 }
 0x1ac   :  { %808 = vmatpush1.bf16.msra.mxu0 %v1053_v62 }
 0x1ad   :  { %810 = vmatprep.subr.bf16.mxu0 %v1056_v63 }
 0x1b0   :  { %812 = vmatpush1.bf16.msra.mxu0 %v1059_v3 }
 0x1b1   :  { %814 = vmatprep.subr.bf16.mxu0 %v1062_v4 }
 0x1b4   :  { %816 = vmatpush1.bf16.msra.mxu0 %v1065_v9 }
 0x1b5   :  { %818 = vmatprep.subr.bf16.mxu0 %v1068_v10 }
 0x1b8   :  { %820 = vmatpush1.bf16.msra.mxu0 %v1071_v15 }
 0x1b9   :  { %822 = vmatprep.subr.bf16.mxu0 %v1074_v16 }
 0x1bc   :  { %824 = vmatpush1.bf16.msra.mxu0 %v1077_v21 }
 0x1bd   :  { %826 = vmatprep.subr.bf16.mxu0 %v1080_v22 }
 0x1c0   :  { %828 = vmatpush1.bf16.msra.mxu0 %v1083_v27 }
 0x1c1   :  { %830 = vmatprep.subr.bf16.mxu0 %v1086_v28 }
 0x1c4   :  { %832 = vmatpush1.bf16.msra.mxu0 %v1089_v33 }
 0x1c5   :  { %834 = vmatprep.subr.bf16.mxu0 %v1092_v34 }
 0x1c8   :  { %836 = vmatpush1.bf16.msra.mxu0 %v1095_v39 }
 0x1c9   :  { %838 = vmatprep.subr.bf16.mxu0 %v1098_v45 }
 0x1cc   :  { %840 = vmatpush1.bf16.msra.mxu0 %v1101_v53 }
 0x1cd   :  { %842 = vmatprep.subr.bf16.mxu0 %v1104_v54 }
 0x1d0   :  { %844 = vmatpush1.bf16.msra.mxu0 %v1107_v61 }
 0x1d1   :  { %846 = vmatprep.subr.bf16.mxu0 %v1110_v0 }
 0x1d4   :  { %848 = vmatpush1.bf16.msra.mxu0 %v1113_v6 }
 0x1d5   :  { %850 = vmatprep.subr.bf16.mxu0 %v1116_v7 }
 0x1d8   :  { %852 = vmatpush1.bf16.msra.mxu0 %v1119_v14 }
 0x1d9   :  { %854 = vmatprep.subr.bf16.mxu0 %v1122_v17 }
 0x1dc   :  { %856 = vmatpush1.bf16.msra.mxu0 %v1193_v42 }
 0x1df   :  { %521 = vmatmul.mubr.f32.vlgmr.msra.gmra.mrb[6].mxu0 %v365_v55 }
 0x1e0   :  { %526 = vmatprep.mubr.f32.mxu0 %v372_v59 }
 0x1e3   :  { %527 = vmatmul.mubr.f32.gmra.mrb[0].mxu0 %v371_v49 }
 0x1e4   :  { %532 = vmatprep.mubr.f32.mxu0 %v870_v20 }
 0x1e7   :  { %533 = vmatmul.mubr.f32.gmra.mrb[8].mxu0 %v868_v19 }
 0x276   :  { %v445_v44 = vpop.f32.mrb[2].mxu0 }
 0x277   :  { %v447_v50 = vpop.f32.mrb[3].mxu0 }
 0x27a   :  { %v451_v51 = vpop.f32.mrb[4].mxu0 }
 0x27b   :  { %v537_v56 = vmul.f32 0.00390625, %v451_v51  ;;  %v453_v57 = vpop.f32.mrb[5].mxu0 }
 0x27c   :  { %v538_v62 = vmul.f32 0.00390625, %v453_v57 }
 0x27d   :  { %539 = vst [vmem:[#allocation7] sm:$0xff] %v537_v56 }
 0x27e   :  { %540 = vst [vmem:[#allocation7 + $0x8] sm:$0xff] %v538_v62 }
 0x27f   :  { %930 = shalt.err (!%p927_p6)
}
 0x280   :  { %s931_s16 = scalar_lea.hbm %s1189_s2, 256 }
 0x281   :  { %p932_p7 = scmp.ne.s32.totalorder %s1189_s2, %s931_s16  ;;  %p935_p8 = scmp.lt.u32.totalorder %s931_s16, %s1189_s2 }
 0x283   :  { %p937_p9 = pnand %p935_p8, %p932_p7 }
 0x285   :  { %940 = shalt.err (!%p937_p9)
}
 0x286   :  { %580 = dma.vmem_to_hbm [thread:$0]  %s578_s12, 256, %s1189_s2, [#allocation4]  }
 0x287   :  { %s978_s2 = smov [#allocation8]  }
 0x288   :  { %s587_s23 = sshll.u32 %s978_s2, 4  ;;  %s588_s23 = int_to_ptr.vmem [resolvable:$true] %s587_s23 }
 0x289   :  { %s941_s24 = scalar_lea.vmem %s588_s23, 256  ;;  %p946_p11 = scmp.lt.s32.totalorder %s588_s23, %s588_s23 }
 0x28a   :  { %p942_p10 = scmp.ne.s32.totalorder %s588_s23, %s941_s24  ;;  %p947_p12 = scmp.lt.s32.totalorder %s941_s24, %s941_s24 }
 0x28c   :  { %p948_p13 = por %p947_p12, %p946_p11 }
 0x28e   :  { %p949_p0 = pnand %p948_p13, %p942_p10 }
 0x2b2   :  { %v522_v63 = vpop.f32.mrb[6].mxu0 }
 0x2b3   :  { %v545_v3 = vsub.f32 %v445_v44, %v522_v63  ;;  %v524_v4 = vpop.f32.mrb[7].mxu0 }
 0x2b4   :  { %v546_v9 = vsub.f32 %v447_v50, %v524_v4 }
 0x2b5   :  { %v547_v10 = vmul.f32 0.00390625, %v545_v3 }
 0x2b6   :  { %v548_v15 = vmul.f32 0.00390625, %v546_v9  ;;  %v528_v16 = vpop.f32.mrb[0].mxu0 }
 0x2b7   :  { %v543_v21 = vmul.f32 0.00390625, %v528_v16  ;;  %v530_v22 = vpop.f32.mrb[1].mxu0  ;;  %v551_v28 = vmul.f32 %v547_v10, %v547_v10 }
 0x2b8   :  { %v544_v27 = vmul.f32 0.00390625, %v530_v22  ;;  %v552_v34 = vmul.f32 %v548_v15, %v548_v15 }
 0x2b9   :  { %v549_v33 = vmul.f32 %v543_v21, %v543_v21 }
 0x2ba   :  { %v550_v39 = vmul.f32 %v544_v27, %v544_v27  ;;  %v534_v45 = vpop.f32.mrb[8].mxu0 }
 0x2bb   :  { %v553_v53 = vadd.f32 %v551_v28, %v549_v33  ;;  %v535_v54 = vpop.f32.mrb[9].mxu0 }
 0x2bc   :  { %v554_v61 = vadd.f32 %v552_v34, %v550_v39 }
 0x2bd   :  { %871 = vrsqrt.f32 %v553_v53  ;;  %vm557_vm0 = vcmp.eq.f32.partialorder %v553_v53, inf  ;;  %v560_v14 = vand.u32 2147483648, %v553_v53  ;;  %vm559_vm1 = vcmp.eq.f32.partialorder %v553_v53, 0.0 }
 0x2be   :  { %873 = vrsqrt.f32 %v554_v61  ;;  %vm564_vm2 = vcmp.eq.f32.partialorder %v554_v61, inf  ;;  %v567_v25 = vand.u32 2147483648, %v554_v61  ;;  %vm566_vm3 = vcmp.eq.f32.partialorder %v554_v61, 0.0 }
 0x2c7   :  { %v872_v0 = vpop.eup %871 }
 0x2c8   :  { %v874_v6 = vpop.eup %873  ;;  %v556_v7 = vmul.f32 %v872_v0, %v553_v53 }
 0x2c9   :  { %v563_v17 = vmul.f32 %v874_v6, %v554_v61 }
 0x2ca   :  { %v558_v20 = vsel %vm557_vm0, %v553_v53, %v556_v7 }
 0x2cb   :  { %v561_v29 = vsel %vm559_vm1, %v560_v14, %v558_v20  ;;  %v565_v37 = vsel %vm564_vm2, %v554_v61, %v563_v17 }
 0x2cc   :  { %v568_v40 = vsel %vm566_vm3, %v567_v25, %v565_v37  ;;  %569 = vst [vmem:[#allocation8] sm:$0xff] %v561_v29 }
 0x2cd   :  { %570 = vst [vmem:[#allocation8 + $0x8] sm:$0xff] %v568_v40 }
 0x2ce   :  { %952 = shalt.err (!%p949_p0)
}
 0x2cf   :  { %s953_s27 = scalar_lea.hbm %s1190_s3, 256 }
 0x2d0   :  { %p954_p1 = scmp.ne.s32.totalorder %s1190_s3, %s953_s27  ;;  %p957_p2 = scmp.lt.u32.totalorder %s953_s27, %s1190_s3 }
 0x2d2   :  { %p959_p3 = pnand %p957_p2, %p954_p1 }
 0x2d4   :  { %962 = shalt.err (!%p959_p3)
}
 0x2d5   :  { %590 = dma.vmem_to_hbm [thread:$0]  %s588_s23, 256, %s1190_s3, [#allocation9]  }
 0x2d6   :  { %967 = dma.done.wait [#allocation4], 256  }
 0x2d7   :  { %968 = vsyncadd [#allocation4], 4294967040 }
 0x2d8   :  { %969 = dma.done.wait [#allocation9], 256  }
 0x2d9   :  { %970 = vsyncadd [#allocation9], 4294967040 }
 0x2da   :  { %597 = vsyncpa [#allocation3], 1 }
 0x2db   :  { %598 = vsyncpa [#allocation6], 1 }
 0x2dc   :  { %599 = vsyncpa [#allocation4], 1 }
 0x2dd   :  { %600 = vsyncpa [#allocation9], 1 }

</bundles_post_ra>
